<compile_context>
chip_gen: v5e
topology: v5e:2x2
jax: 0.10.0
libtpu: 0.0.40
codegen_flags: <defaults>
</compile_context>

<pallas_src>
import functools
import math

import jax
import jax.numpy as jnp
from jax.experimental import pallas as pl
from jax.experimental.pallas import tpu as pltpu


# ---------------------------------------------------------------------------
# pe buffer construction (matches the PyTorch __init__ math)
# ---------------------------------------------------------------------------
def make_positional_encoding_table(d_model, max_len=5000, dtype=jnp.float32):
    assert d_model % 2 == 0, "d_model must be even (sin/cos interleave)"
    position = jnp.arange(max_len, dtype=jnp.float32)[:, None]            # (L, 1)
    div_term = jnp.exp(
        jnp.arange(0, d_model, 2, dtype=jnp.float32)
        * (-math.log(10000.0) / d_model)
    )                                                                     # (D/2,)
    pe = jnp.zeros((max_len, d_model), dtype=jnp.float32)
    pe = pe.at[:, 0::2].set(jnp.sin(position * div_term))
    pe = pe.at[:, 1::2].set(jnp.cos(position * div_term))
    return pe.astype(dtype)                                               # (L, D)


# ---------------------------------------------------------------------------
# Kernels (operate on the lane-dense (tile_s, B*D) slab)
# ---------------------------------------------------------------------------
def _pe_add_kernel(x_ref, pe_ref, o_ref, *, batch):
    # x_ref: (tile_s, B*D), pe_ref: (tile_s, D).
    # jnp.tile along lanes replicates pe once per batch slot, matching the
    # b*D + d flattening of x.
    pe_b = jnp.tile(pe_ref[...], (1, batch))
    o_ref[...] = x_ref[...] + pe_b


def _pe_add_dropout_kernel(x_ref, pe_ref, bits_ref, o_ref, *,
                           batch, threshold, scale):
    y = x_ref[...] + jnp.tile(pe_ref[...], (1, batch))
    # Inverted dropout: keep iff uniform uint32 >= rate * 2^32 (prob 1 - rate).
    keep = bits_ref[...] >= jnp.uint32(threshold)
    o_ref[...] = jnp.where(
        keep, y * jnp.asarray(scale, y.dtype), jnp.zeros_like(y)
    ).astype(o_ref.dtype)


# ---------------------------------------------------------------------------
# Tile sizing: biggest seq tile whose double-buffered blocks fit the budget.
# ---------------------------------------------------------------------------
def _pick_tile_s(S, row_bytes, *, budget_bytes=16 * 1024 * 1024, sublane=8):
    max_rows = max(sublane, budget_bytes // max(1, 2 * row_bytes))
    if S <= max_rows:
        return S                                   # whole seq fits: grid of 1
    return max(sublane, (max_rows // sublane) * sublane)  # multiple of 8


# ---------------------------------------------------------------------------
# Wrapper
# ---------------------------------------------------------------------------
def positional_encoding_forward(x, pe, *, dropout_rate=0.1, train=False,
                                rng_key=None, tile_s=None):
    """x: (S, B, D); pe: (max_len, D). Returns (S, B, D)."""
    S, B, D = x.shape
    assert S <= pe.shape[0] and D == pe.shape[1]
    dtype = x.dtype
    BD = B * D

    x2 = x.reshape(S, BD)                    # free reshape: lane-dense slab
    pe_s = pe[:S].astype(dtype)              # (S, D)

    use_dropout = bool(train) and dropout_rate > 0.0
    itemsize = jnp.dtype(dtype).itemsize
    # bytes per sequence row across all pipelined blocks: x + out (+ bits) + pe
    row_bytes = 2 * BD * itemsize + D * itemsize + (BD * 4 if use_dropout else 0)
    if tile_s is None:
        tile_s = _pick_tile_s(S, row_bytes)
    tile_s = min(tile_s, S)

    grid = (pl.cdiv(S, tile_s),)
    out_shape = jax.ShapeDtypeStruct((S, BD), dtype)
    cparams = pltpu.CompilerParams(
        dimension_semantics=("parallel",),
        vmem_limit_bytes=32 * 1024 * 1024,
    )
    x_spec = pl.BlockSpec((tile_s, BD), lambda i: (i, 0))
    pe_spec = pl.BlockSpec((tile_s, D), lambda i: (i, 0))
    out_spec = pl.BlockSpec((tile_s, BD), lambda i: (i, 0))

    if not use_dropout:
        out2 = pl.pallas_call(
            functools.partial(_pe_add_kernel, batch=B),
            out_shape=out_shape,
            grid_spec=pltpu.PrefetchScalarGridSpec(
                num_scalar_prefetch=0,
                grid=grid,
                in_specs=[x_spec, pe_spec],
                out_specs=out_spec,
            ),
            compiler_params=cparams,
        )(x2, pe_s)
    else:
        if rng_key is None:
            rng_key = jax.random.PRNGKey(0)
        # TODO(synk): on real hardware pltpu.prng_random_bits could generate the
        # mask in-kernel and skip this HBM read, but it has no CPU/interpret
        # lowering; bits are produced with jax.random for portability.
        bits = jax.random.bits(rng_key, (S, BD), dtype=jnp.uint32)
        bits_spec = pl.BlockSpec((tile_s, BD), lambda i: (i, 0))
        threshold = min(int(round(float(dropout_rate) * 2.0 ** 32)), 2 ** 32 - 1)
        scale = 1.0 / (1.0 - float(dropout_rate))
        out2 = pl.pallas_call(
            functools.partial(_pe_add_dropout_kernel, batch=B,
                              threshold=threshold, scale=scale),
            out_shape=out_shape,
            grid_spec=pltpu.PrefetchScalarGridSpec(
                num_scalar_prefetch=0,
                grid=grid,
                in_specs=[x_spec, pe_spec, bits_spec],
                out_specs=out_spec,
            ),
            compiler_params=cparams,
        )(x2, pe_s, bits)

    return out2.reshape(S, B, D)


# ---------------------------------------------------------------------------
# Demo / correctness check
# ---------------------------------------------------------------------------
if __name__ == "__main__":
    d_model = 32
    max_len = 64
    seq_len = 8
    batch = 2
    dropout_p = 0.1

    key = jax.random.PRNGKey(0)
    kx, kd = jax.random.split(key)
    x = jax.random.normal(kx, (seq_len, batch, d_model), dtype=jnp.float32)
    pe = make_positional_encoding_table(d_model, max_len=max_len)

    # Eval-mode forward (dropout is identity, as in nn.Dropout.eval()).
    out_eval = positional_encoding_forward(x, pe, dropout_rate=dropout_p,
                                           train=False)
    out_eval = jax.block_until_ready(out_eval)

    ref = x + pe[:seq_len][:, None, :]
    assert out_eval.shape == x.shape and out_eval.dtype == x.dtype
    assert jnp.allclose(out_eval, ref, atol=1e-6, rtol=1e-6), "eval mismatch"

    # Training-mode forward (inverted dropout with a uint32-threshold mask).
    # NOTE: PyTorch's dropout RNG stream cannot be reproduced bit-exactly.
    out_train = positional_encoding_forward(x, pe, dropout_rate=dropout_p,
                                            train=True, rng_key=kd)
    out_train = jax.block_until_ready(out_train)
    assert out_train.shape == x.shape
    # Surviving elements equal (x + pe) / (1 - p); dropped elements are 0.
    scale = 1.0 / (1.0 - dropout_p)
    kept = out_train != 0.0
    assert jnp.allclose(jnp.where(kept, out_train, 0.0),
                        jnp.where(kept, ref * scale, 0.0),
                        atol=1e-5, rtol=1e-5), "train mismatch"

    print("KERNEL_OK")
</pallas_src>

<mosaic_0001>
module attributes {stable_mosaic.version = 11 : i64} {
  func.func @_pe_add_kernel(%arg0: i32, %arg1: memref<8x64xf32, #tpu.memory_space<vmem>>, %arg2: memref<8x32xf32, #tpu.memory_space<vmem>>, %arg3: memref<8x64xf32, #tpu.memory_space<vmem>>) attributes {dimension_semantics = [#tpu.dimension_semantics<parallel>], iteration_bounds = array<i64: 1>, scalar_prefetch = 0 : i64, scratch_operands = 0 : i64, tpu.core_type = #tpu.core_type<tc>, window_params = [{transform_indices = @transform_0, window_bounds = array<i64: 8, 64>}, {transform_indices = @transform_1, window_bounds = array<i64: 8, 32>}, {transform_indices = @transform_2, window_bounds = array<i64: 8, 64>}]} {
    %c0 = arith.constant 0 : index
    %c0_0 = arith.constant 0 : index
    %0 = vector.load %arg2[%c0, %c0_0] : memref<8x32xf32, #tpu.memory_space<vmem>>, vector<8x32xf32>
    %1 = tpu.concatenate %0, %0 in 1 : vector<8x32xf32>, vector<8x32xf32> -> vector<8x64xf32>
    %c0_1 = arith.constant 0 : index
    %c0_2 = arith.constant 0 : index
    %2 = vector.load %arg1[%c0_1, %c0_2] : memref<8x64xf32, #tpu.memory_space<vmem>>, vector<8x64xf32>
    %3 = arith.addf %2, %1 : vector<8x64xf32>
    %c0_3 = arith.constant 0 : index
    %c0_4 = arith.constant 0 : index
    %4 = vector.load %arg3[%c0_3, %c0_4] : memref<8x64xf32, #tpu.memory_space<vmem>>, vector<8x64xf32>
    tpu.vector_store %arg3[%c0_3, %c0_4], %3 {strides = array<i32>} : memref<8x64xf32, #tpu.memory_space<vmem>>, vector<8x64xf32>,
    return
  }
  func.func @transform_0(%arg0: i32) -> (i32, i32) {
    %c0_i32 = arith.constant 0 : i32
    %c0_i32_0 = arith.constant 0 : i32
    return %arg0, %c0_i32 : i32, i32
  }
  func.func @transform_1(%arg0: i32) -> (i32, i32) {
    %c0_i32 = arith.constant 0 : i32
    %c0_i32_0 = arith.constant 0 : i32
    return %arg0, %c0_i32 : i32, i32
  }
  func.func @transform_2(%arg0: i32) -> (i32, i32) {
    %c0_i32 = arith.constant 0 : i32
    %c0_i32_0 = arith.constant 0 : i32
    return %arg0, %c0_i32 : i32, i32
  }
}

</mosaic_0001>

<bundles_post_ra>
// kernel: tpu_custom_call.1
= control target key start
LH: loop header
LB: loop body
LE: loop exit
PB: predicated region body
PF: predicated region fallthrough
CT: control target
= control target key end

     0   :  { %7 = vsyncpa [#allocation3], 0  ;;  %s179_s0 = inlined_call_operand.hbm [shape: f32[8,64], index: 0, kind: input, shape index: {}]   ;;  %s180_s1 = inlined_call_operand.hbm [shape: f32[8,32], index: 1, kind: input, shape index: {}]   ;;  %s181_s2 = inlined_call_operand.hbm [shape: f32[8,64], index: 2, kind: output, shape index: {}]  }
   0x1   :  { %8 = vsyncpa [#allocation6], 0 }
   0x2   :  { %9 = vsyncpa [#allocation4], 0  ;;  %s15_s11 = sshll.u32 %s179_s0, 4  ;;  %s151_s12 = smov [#allocation2]   ;;  %s16_s11 = int_to_ptr.hbm [resolvable:$true] %s15_s11 }
   0x3   :  { %s17_s13 = sshll.u32 %s151_s12, 4  ;;  %s26_s16 = sshll.u32 %s180_s1, 4  ;;  %s18_s13 = int_to_ptr.vmem [resolvable:$true] %s17_s13  ;;  %s27_s16 = int_to_ptr.hbm [resolvable:$true] %s26_s16 }
   0x4   :  { %20 = dma.hbm_to_vmem [thread:$0]  %s16_s11, 128, %s18_s13, [#allocation3]  }
   0x5   :  { %s152_s17 = smov [#allocation5]  }
   0x6   :  { %s28_s18 = sshll.u32 %s152_s17, 4  ;;  %s29_s18 = int_to_ptr.vmem [resolvable:$true] %s28_s18 }
   0x7   :  { %31 = dma.hbm_to_vmem [thread:$0]  %s27_s16, 128, %s29_s18, [#allocation6]  }
   0x8   :  { %145 = dma.done.wait [#allocation3], 128  }
   0x9   :  { %146 = vsyncadd [#allocation3], 4294967168 }
   0xa   :  { %147 = dma.done.wait [#allocation6], 128  }
   0xb   :  { %148 = vsyncadd [#allocation6], 4294967168  ;;  %v40_v0 = vld [vmem:[#allocation5] sm:$0xff]  ;;  %s153_s0 = smov 32   ;;  %vm45_vm0 = vcmask 261120   ;;  %v47_v1 = vld [vmem:[#allocation2] sm:$0xff] }
   0xc   :  { %42 = vrot.lane.b32.xlu0 %v40_v0, %s153_s0  ;;  %s154_s19 = smov [#allocation7]   ;;  %s58_s1 = sshll.u32 %s181_s2, 4  ;;  %vm49_vm1 = vcmask 523264   ;;  %s59_s1 = int_to_ptr.hbm [resolvable:$true] %s58_s1 }
   0xd   :  { %s56_s20 = sshll.u32 %s154_s19, 4  ;;  %s57_s20 = int_to_ptr.vmem [resolvable:$true] %s56_s20 }
  0x7e   :  { %v43_v2 = vpop.permute.xlu0 %42 }
  0x7f   :  { %v46_v3 = vsel %vm45_vm0, %v40_v0, %v43_v2 }
  0x80   :  { %v48_v4 = vadd.f32 %v47_v1, %v46_v3 }
  0x82   :  { %50 = vst.msk [vmem:[#allocation7] sm:$0xff] %vm49_vm1, %v48_v4 }
  0x83   :  { %61 = dma.vmem_to_hbm [thread:$0]  %s57_s20, 128, %s59_s1, [#allocation4]  }
  0x84   :  { %149 = dma.done.wait [#allocation4], 128  }
  0x85   :  { %150 = vsyncadd [#allocation4], 4294967168 }
  0x86   :  { %66 = vsyncpa [#allocation3], 1 }
  0x87   :  { %67 = vsyncpa [#allocation6], 1 }
  0x88   :  { %68 = vsyncpa [#allocation4], 1 }

</bundles_post_ra>
